<compile_context>
chip_gen: v7x
topology: tpu7x:2x2x1
jax: 0.10.0
libtpu: 0.0.40
codegen_flags: <defaults>
</compile_context>

<pallas_src>
import math
import jax
import jax.numpy as jnp
from jax.experimental import pallas as pl
from jax.experimental.pallas import tpu as pltpu

# ---------------- model hyper-params (small, deterministic) ----------------
BATCH = 2          # self.batch_size
SEQ_LEN = 8        # time steps per sequence
INPUT_DIM1 = 4     # modal[0]
INPUT_DIM2 = 4     # num_features - modal[0]
HIDDEN_DIM = 32    # hidden_dim ; combined hidden 2H = 64, combined gates 8H = 256


# ------------------------------ fused Pallas kernel ------------------------------
def mlstm_fused_kernel(x_ref, w_ih_ref, w_hh_ref, b_ref, w_out_ref, b_out_ref,
                       out_ref):
    """Both LSTM recurrences (block-diagonal fused) + linear head, one launch.

    x_ref     : (T*B, D1+D2) f32   time-major rows: row t*B + b is step t, batch b
    w_ih_ref  : (D1+D2, 8H)  bf16  block-diagonal input->gates weights
    w_hh_ref  : (2H, 8H)     bf16  block-diagonal hidden->gates weights
    b_ref     : (1, 8H)      f32   fused biases (b_ih + b_hh, both LSTMs)
    w_out_ref : (1, 2H)      f32   head weight row (concat(h1, h2) layout)
    b_out_ref : (1, 1)       f32   head bias
    out_ref   : (B, 4H)      f32   lanes [0,2H)  = last-step [h1 | h2]
                                   lanes [2H,4H) = head prediction (broadcast)
    Gate lane layout per gate g in (i, f, g, o): [g_lstm1 (H) | g_lstm2 (H)].
    """
    B = out_ref.shape[0]
    TB, _ = x_ref.shape
    T = TB // B
    HH = w_hh_ref.shape[0]                    # combined hidden = 2 * H
    G = w_hh_ref.shape[1]                     # combined gates  = 8 * H

    w_hh = w_hh_ref[...]                      # bf16, loaded once, loop-invariant

    # ---- prologue: input projection hoisted off the recurrence path ----
    # One (T*B, D) x (D, 8H) MXU call with the bias folded in (perf item 1).
    x_all = x_ref[...].astype(jnp.bfloat16)
    xw = jnp.dot(x_all, w_ih_ref[...],
                 preferred_element_type=jnp.float32) + b_ref[...]   # (T*B, 8H) f32

    # Loop-invariant per-lane scale/shift implementing
    #   act = tanh(gates)    on the "g" gate lanes [2*HH, 3*HH)
    #   act = sigmoid(gates) on all other lanes
    # via tanh(x) = 2*sigmoid(2x) - 1 -> a single sigmoid pass per step
    # (perf item 2).  Built once before the loop (no per-step broadcasts).
    lane = jax.lax.broadcasted_iota(jnp.int32, (B, G), 1)
    g_mask = (lane >= 2 * HH) & (lane < 3 * HH)
    scale = jnp.where(g_mask, 2.0, 1.0)
    shift = jnp.where(g_mask, 1.0, 0.0)

    h = jnp.zeros((B, HH), jnp.float32)
    c = jnp.zeros((B, HH), jnp.float32)

    # T is tiny and static: fully unrolled recurrence, no grid / pipeline
    # overhead.  w_hh is loop-invariant; explicit pltpu.matmul_push_rhs
    # residency was considered but jnp.dot is kept for portability.
    for t in range(T):
        # bf16 operands, f32 accumulation; h/c carries stay f32 (perf item 3).
        gates = xw[t * B:(t + 1) * B, :] + jnp.dot(
            h.astype(jnp.bfloat16), w_hh, preferred_element_type=jnp.float32)
        act = jax.nn.sigmoid(gates * scale) * scale - shift        # (B, 8H)
        i_g = act[:, 0 * HH:1 * HH]
        f_g = act[:, 1 * HH:2 * HH]
        g_g = act[:, 2 * HH:3 * HH]
        o_g = act[:, 3 * HH:4 * HH]
        c = f_g * c + i_g * g_g
        h = o_g * jnp.tanh(c)

    # ---- epilogue: linear head as VPU multiply + lane reduce ----
    pred = (jnp.sum(h * w_out_ref[...], axis=-1, keepdims=True)
            + b_out_ref[...])                                       # (B, 1)
    # Single lane-dense 128-wide store: [ h | pred broadcast ] (perf item 4).
    out_ref[...] = jnp.concatenate(
        [h, jnp.broadcast_to(pred, (B, HH))], axis=-1)


def run_mlstm_fused(x_flat, w_ih, w_hh, b, w_out_row, b_out):
    """Single pallas_call: whole problem (<100 KiB) resident in VMEM, no grid."""
    HH = w_hh.shape[0]
    vmem = pl.BlockSpec(memory_space=pltpu.MemorySpace.VMEM)
    out = pl.pallas_call(
        mlstm_fused_kernel,
        out_shape=jax.ShapeDtypeStruct((BATCH, 2 * HH), jnp.float32),
        in_specs=[vmem] * 6,
        out_specs=vmem,
    )(x_flat, w_ih, w_hh, b, w_out_row, b_out)
    h_fin = out[:, :HH]
    pred = out[:, HH:HH + 1]
    return h_fin, pred


# ------------------------------ parameter prep ------------------------------
def init_params(key):
    """Deterministic synthetic params matching PyTorch MLSTM.__init__ shapes."""
    ks = jax.random.split(key, 12)
    H = HIDDEN_DIM
    bound = 1.0 / math.sqrt(H)          # PyTorch nn.LSTM default init range

    def u(k, shape, lo, hi):
        return jax.random.uniform(k, shape, jnp.float32, lo, hi)

    params = {}
    # lstm1: weight_ih (4H, D1), weight_hh (4H, H), biases (4H,) each
    params["w_ih1"] = u(ks[0], (4 * H, INPUT_DIM1), -bound, bound)
    params["w_hh1"] = u(ks[1], (4 * H, H), -bound, bound)
    params["b1"] = (u(ks[2], (4 * H,), -bound, bound)
                    + u(ks[3], (4 * H,), -bound, bound))  # b_ih + b_hh
    # lstm2
    params["w_ih2"] = u(ks[4], (4 * H, INPUT_DIM2), -bound, bound)
    params["w_hh2"] = u(ks[5], (4 * H, H), -bound, bound)
    params["b2"] = (u(ks[6], (4 * H,), -bound, bound)
                    + u(ks[7], (4 * H,), -bound, bound))
    # hiddenout: Linear(2H, 1), xavier_uniform weight, zero bias
    xav = math.sqrt(6.0 / (2 * H + 1))
    params["w_out"] = u(ks[8], (1, 2 * H), -xav, xav)
    params["b_out"] = jnp.zeros((1,), jnp.float32)
    return params


def build_fused_params(p):
    """Block-diagonal fusion of the two LSTMs' weights (weights emitted in bf16).

    Combined gate layout (8H lanes): [i1|i2, f1|f2, g1|g2, o1|o2], each sub-block H.
    Combined state layout (2H lanes): [state1 | state2].
    """
    H = HIDDEN_DIM
    D1, D2 = INPUT_DIM1, INPUT_DIM2
    HH = 2 * H
    w_ih1_t = p["w_ih1"].T.astype(jnp.float32)   # (D1, 4H)
    w_ih2_t = p["w_ih2"].T.astype(jnp.float32)   # (D2, 4H)
    w_hh1_t = p["w_hh1"].T.astype(jnp.float32)   # (H, 4H)
    w_hh2_t = p["w_hh2"].T.astype(jnp.float32)   # (H, 4H)

    w_ih = jnp.zeros((D1 + D2, 4 * HH), jnp.float32)
    w_hh = jnp.zeros((HH, 4 * HH), jnp.float32)
    b = jnp.zeros((4 * HH,), jnp.float32)
    for g in range(4):                            # PyTorch gate order i, f, g, o
        src = slice(g * H, (g + 1) * H)
        dst1 = slice(g * HH, g * HH + H)
        dst2 = slice(g * HH + H, (g + 1) * HH)
        w_ih = w_ih.at[:D1, dst1].set(w_ih1_t[:, src])
        w_ih = w_ih.at[D1:, dst2].set(w_ih2_t[:, src])
        w_hh = w_hh.at[:H, dst1].set(w_hh1_t[:, src])
        w_hh = w_hh.at[H:, dst2].set(w_hh2_t[:, src])
        b = b.at[dst1].set(p["b1"][src])
        b = b.at[dst2].set(p["b2"][src])
    # Single-pass bf16 MXU operands (perf item 3); bias stays f32.
    return (w_ih.astype(jnp.bfloat16), w_hh.astype(jnp.bfloat16),
            b.reshape(1, -1))


# ------------------------------ forward wrapper ------------------------------
def mlstm_forward(seq1, seq2, params):
    """Mirrors MLSTM.forward (last-step outputs). seq1: (B*T, D1), seq2: (B*T, D2)."""
    H = HIDDEN_DIM
    x1 = seq1.reshape(BATCH, -1, INPUT_DIM1)                 # (B, T, D1)
    x2 = seq2.reshape(BATCH, -1, INPUT_DIM2)                 # (B, T, D2)
    x = jnp.concatenate([x1, x2], axis=-1).astype(jnp.float32)
    T = x.shape[1]
    # time-major flattened rows (row t*B + b) for the in-kernel prologue matmul
    x_flat = jnp.transpose(x, (1, 0, 2)).reshape(T * BATCH, -1)

    w_ih, w_hh, b = build_fused_params(params)
    w_out_row = params["w_out"].astype(jnp.float32)          # (1, 2H), concat(h1,h2) order
    b_out = params["b_out"].reshape(1, 1).astype(jnp.float32)

    # NOTE: lstm_out1 / lstm_out2 always share seq_len here, so the
    # zero-padding branch in the reference forward is never taken.
    h_fin, predict = run_mlstm_fused(x_flat, w_ih, w_hh, b, w_out_row, b_out)
    h1 = h_fin[:, :H]
    h2 = h_fin[:, H:]
    return predict, (h1, h2)


# ------------------------------ pure-JAX reference ------------------------------
def lstm_ref(x_btd, w_ih, w_hh, b):
    H = w_hh.shape[0] // 4          # w_hh: (4H, H)
    B = x_btd.shape[0]

    def step(carry, x_t):
        h, c = carry
        g = x_t @ w_ih.T + h @ w_hh.T + b
        i = jax.nn.sigmoid(g[:, :H])
        f = jax.nn.sigmoid(g[:, H:2 * H])
        gg = jnp.tanh(g[:, 2 * H:3 * H])
        o = jax.nn.sigmoid(g[:, 3 * H:])
        c = f * c + i * gg
        h = o * jnp.tanh(c)
        return (h, c), h

    (h, _), _ = jax.lax.scan(step,
                             (jnp.zeros((B, H)), jnp.zeros((B, H))),
                             jnp.transpose(x_btd, (1, 0, 2)))
    return h


def mlstm_ref(seq1, seq2, p):
    x1 = seq1.reshape(BATCH, -1, INPUT_DIM1)
    x2 = seq2.reshape(BATCH, -1, INPUT_DIM2)
    h1 = lstm_ref(x1, p["w_ih1"], p["w_hh1"], p["b1"])
    h2 = lstm_ref(x2, p["w_ih2"], p["w_hh2"], p["b2"])
    shared = jnp.concatenate([h1, h2], axis=-1)
    return shared @ p["w_out"].T + p["b_out"], (h1, h2)


# ------------------------------ main ------------------------------
if __name__ == "__main__":
    key = jax.random.PRNGKey(0)
    k_p, k_s1, k_s2 = jax.random.split(key, 3)
    params = init_params(k_p)

    seq1 = jax.random.normal(k_s1, (BATCH * SEQ_LEN, INPUT_DIM1), jnp.float32)
    seq2 = jax.random.normal(k_s2, (BATCH * SEQ_LEN, INPUT_DIM2), jnp.float32)

    predict, (h1, h2) = mlstm_forward(seq1, seq2, params)
    jax.block_until_ready((predict, h1, h2))

    ref_pred, (ref_h1, ref_h2) = mlstm_ref(seq1, seq2, params)
    # Kernel uses single-pass bf16 MXU operands (per perf review) with f32
    # carries/accumulation; expected deviation vs. the full-f32 reference over
    # the 8-step recurrence is O(1e-3), so compare at 1e-2.
    TOL = dict(atol=1e-2, rtol=1e-2)
    assert jnp.allclose(predict, ref_pred, **TOL)
    assert jnp.allclose(h1, ref_h1, **TOL)
    assert jnp.allclose(h2, ref_h2, **TOL)

    print("KERNEL_OK")
</pallas_src>

<mosaic_0001>
module attributes {stable_mosaic.version = 11 : i64} {
  func.func @mlstm_fused_kernel(%arg0: memref<16x8xf32, #tpu.memory_space<vmem>>, %arg1: memref<8x256xbf16, #tpu.memory_space<vmem>>, %arg2: memref<64x256xbf16, #tpu.memory_space<vmem>>, %arg3: memref<1x256xf32, #tpu.memory_space<vmem>>, %arg4: memref<1x64xf32, #tpu.memory_space<vmem>>, %arg5: memref<1x1xf32, #tpu.memory_space<vmem>>, %arg6: memref<2x128xf32, #tpu.memory_space<vmem>>) attributes {dimension_semantics = [], scalar_prefetch = 0 : i64, scratch_operands = 0 : i64, tpu.core_type = #tpu.core_type<tc>} {
    %c0 = arith.constant 0 : index
    %c0_0 = arith.constant 0 : index
    %0 = vector.load %arg2[%c0, %c0_0] : memref<64x256xbf16, #tpu.memory_space<vmem>>, vector<64x256xbf16>
    %c0_1 = arith.constant 0 : index
    %c0_2 = arith.constant 0 : index
    %1 = vector.load %arg0[%c0_1, %c0_2] : memref<16x8xf32, #tpu.memory_space<vmem>>, vector<16x8xf32>
    %2 = arith.truncf %1 : vector<16x8xf32> to vector<16x8xbf16>
    %c0_3 = arith.constant 0 : index
    %c0_4 = arith.constant 0 : index
    %3 = vector.load %arg1[%c0_3, %c0_4] : memref<8x256xbf16, #tpu.memory_space<vmem>>, vector<8x256xbf16>
    %cst = arith.constant dense<0.000000e+00> : vector<16x256xf32>
    %4 = tpu.matmul %2, %3, %cst {dimension_numbers = #tpu.dot_dimension_numbers<[1], [0], [0], [1], [0, 0, 1, 1], [], []>} : vector<16x8xbf16>, vector<8x256xbf16>, vector<16x256xf32> -> vector<16x256xf32>
    %c0_5 = arith.constant 0 : index
    %c0_6 = arith.constant 0 : index
    %5 = vector.load %arg3[%c0_5, %c0_6] : memref<1x256xf32, #tpu.memory_space<vmem>>, vector<1x256xf32>
    %6 = vector.broadcast %5 : vector<1x256xf32> to vector<16x256xf32>
    %7 = arith.addf %4, %6 : vector<16x256xf32>
    %8 = tpu.iota {dimensions = array<i32: 1>} : vector<2x256xi32>
    %c128_i32 = arith.constant 128 : i32
    %9 = vector.broadcast %c128_i32 : i32 to vector<2x256xi32>
    %10 = arith.cmpi sge, %8, %9 : vector<2x256xi32>
    %c192_i32 = arith.constant 192 : i32
    %11 = vector.broadcast %c192_i32 : i32 to vector<2x256xi32>
    %12 = arith.cmpi slt, %8, %11 : vector<2x256xi32>
    %13 = arith.andi %10, %12 : vector<2x256xi1>
    %cst_7 = arith.constant 2.000000e+00 : f32
    %cst_8 = arith.constant 1.000000e+00 : f32
    %14 = vector.broadcast %cst_7 : f32 to vector<2x256xf32>
    %15 = vector.broadcast %cst_8 : f32 to vector<2x256xf32>
    %16 = arith.select %13, %14, %15 : vector<2x256xi1>, vector<2x256xf32>
    %cst_9 = arith.constant 1.000000e+00 : f32
    %cst_10 = arith.constant 0.000000e+00 : f32
    %17 = vector.broadcast %cst_9 : f32 to vector<2x256xf32>
    %18 = vector.broadcast %cst_10 : f32 to vector<2x256xf32>
    %19 = arith.select %13, %17, %18 : vector<2x256xi1>, vector<2x256xf32>
    %cst_11 = arith.constant 0.000000e+00 : f32
    %20 = vector.broadcast %cst_11 : f32 to vector<2x64xf32>
    %cst_12 = arith.constant 0.000000e+00 : f32
    %21 = vector.broadcast %cst_12 : f32 to vector<2x64xf32>
    %22 = vector.extract_strided_slice %7 {offsets = [0, 0], sizes = [2, 256], strides = [1, 1]} : vector<16x256xf32> to vector<2x256xf32>
    %23 = arith.truncf %20 : vector<2x64xf32> to vector<2x64xbf16>
    %cst_13 = arith.constant dense<0.000000e+00> : vector<2x256xf32>
    %24 = tpu.matmul %23, %0, %cst_13 {dimension_numbers = #tpu.dot_dimension_numbers<[1], [0], [0], [1], [0, 0, 1, 1], [], []>} : vector<2x64xbf16>, vector<64x256xbf16>, vector<2x256xf32> -> vector<2x256xf32>
    %25 = arith.addf %22, %24 : vector<2x256xf32>
    %26 = arith.mulf %25, %16 : vector<2x256xf32>
    %27 = arith.negf %26 : vector<2x256xf32>
    %28 = math.exp %27 : vector<2x256xf32>
    %cst_14 = arith.constant 1.000000e+00 : f32
    %29 = vector.broadcast %cst_14 : f32 to vector<2x256xf32>
    %30 = arith.addf %29, %28 : vector<2x256xf32>
    %31 = arith.divf %29, %30 : vector<2x256xf32>
    %32 = arith.mulf %31, %16 : vector<2x256xf32>
    %33 = arith.subf %32, %19 : vector<2x256xf32>
    %34 = vector.extract_strided_slice %33 {offsets = [0, 0], sizes = [2, 64], strides = [1, 1]} : vector<2x256xf32> to vector<2x64xf32>
    %35 = vector.extract_strided_slice %33 {offsets = [0, 64], sizes = [2, 64], strides = [1, 1]} : vector<2x256xf32> to vector<2x64xf32>
    %36 = vector.extract_strided_slice %33 {offsets = [0, 128], sizes = [2, 64], strides = [1, 1]} : vector<2x256xf32> to vector<2x64xf32>
    %37 = vector.extract_strided_slice %33 {offsets = [0, 192], sizes = [2, 64], strides = [1, 1]} : vector<2x256xf32> to vector<2x64xf32>
    %38 = arith.mulf %35, %21 : vector<2x64xf32>
    %39 = arith.mulf %34, %36 : vector<2x64xf32>
    %40 = arith.addf %38, %39 : vector<2x64xf32>
    %41 = math.tanh %40 : vector<2x64xf32>
    %42 = arith.mulf %37, %41 : vector<2x64xf32>
    %43 = vector.extract_strided_slice %7 {offsets = [2, 0], sizes = [2, 256], strides = [1, 1]} : vector<16x256xf32> to vector<2x256xf32>
    %44 = arith.truncf %42 : vector<2x64xf32> to vector<2x64xbf16>
    %cst_15 = arith.constant dense<0.000000e+00> : vector<2x256xf32>
    %45 = tpu.matmul %44, %0, %cst_15 {dimension_numbers = #tpu.dot_dimension_numbers<[1], [0], [0], [1], [0, 0, 1, 1], [], []>} : vector<2x64xbf16>, vector<64x256xbf16>, vector<2x256xf32> -> vector<2x256xf32>
    %46 = arith.addf %43, %45 : vector<2x256xf32>
    %47 = arith.mulf %46, %16 : vector<2x256xf32>
    %48 = arith.negf %47 : vector<2x256xf32>
    %49 = math.exp %48 : vector<2x256xf32>
    %cst_16 = arith.constant 1.000000e+00 : f32
    %50 = vector.broadcast %cst_16 : f32 to vector<2x256xf32>
    %51 = arith.addf %50, %49 : vector<2x256xf32>
    %52 = arith.divf %50, %51 : vector<2x256xf32>
    %53 = arith.mulf %52, %16 : vector<2x256xf32>
    %54 = arith.subf %53, %19 : vector<2x256xf32>
    %55 = vector.extract_strided_slice %54 {offsets = [0, 0], sizes = [2, 64], strides = [1, 1]} : vector<2x256xf32> to vector<2x64xf32>
    %56 = vector.extract_strided_slice %54 {offsets = [0, 64], sizes = [2, 64], strides = [1, 1]} : vector<2x256xf32> to vector<2x64xf32>
    %57 = vector.extract_strided_slice %54 {offsets = [0, 128], sizes = [2, 64], strides = [1, 1]} : vector<2x256xf32> to vector<2x64xf32>
    %58 = vector.extract_strided_slice %54 {offsets = [0, 192], sizes = [2, 64], strides = [1, 1]} : vector<2x256xf32> to vector<2x64xf32>
    %59 = arith.mulf %56, %40 : vector<2x64xf32>
    %60 = arith.mulf %55, %57 : vector<2x64xf32>
    %61 = arith.addf %59, %60 : vector<2x64xf32>
    %62 = math.tanh %61 : vector<2x64xf32>
    %63 = arith.mulf %58, %62 : vector<2x64xf32>
    %64 = vector.extract_strided_slice %7 {offsets = [4, 0], sizes = [2, 256], strides = [1, 1]} : vector<16x256xf32> to vector<2x256xf32>
    %65 = arith.truncf %63 : vector<2x64xf32> to vector<2x64xbf16>
    %cst_17 = arith.constant dense<0.000000e+00> : vector<2x256xf32>
    %66 = tpu.matmul %65, %0, %cst_17 {dimension_numbers = #tpu.dot_dimension_numbers<[1], [0], [0], [1], [0, 0, 1, 1], [], []>} : vector<2x64xbf16>, vector<64x256xbf16>, vector<2x256xf32> -> vector<2x256xf32>
    %67 = arith.addf %64, %66 : vector<2x256xf32>
    %68 = arith.mulf %67, %16 : vector<2x256xf32>
    %69 = arith.negf %68 : vector<2x256xf32>
    %70 = math.exp %69 : vector<2x256xf32>
    %cst_18 = arith.constant 1.000000e+00 : f32
    %71 = vector.broadcast %cst_18 : f32 to vector<2x256xf32>
    %72 = arith.addf %71, %70 : vector<2x256xf32>
    %73 = arith.divf %71, %72 : vector<2x256xf32>
    %74 = arith.mulf %73, %16 : vector<2x256xf32>
    %75 = arith.subf %74, %19 : vector<2x256xf32>
    %76 = vector.extract_strided_slice %75 {offsets = [0, 0], sizes = [2, 64], strides = [1, 1]} : vector<2x256xf32> to vector<2x64xf32>
    %77 = vector.extract_strided_slice %75 {offsets = [0, 64], sizes = [2, 64], strides = [1, 1]} : vector<2x256xf32> to vector<2x64xf32>
    %78 = vector.extract_strided_slice %75 {offsets = [0, 128], sizes = [2, 64], strides = [1, 1]} : vector<2x256xf32> to vector<2x64xf32>
    %79 = vector.extract_strided_slice %75 {offsets = [0, 192], sizes = [2, 64], strides = [1, 1]} : vector<2x256xf32> to vector<2x64xf32>
    %80 = arith.mulf %77, %61 : vector<2x64xf32>
    %81 = arith.mulf %76, %78 : vector<2x64xf32>
    %82 = arith.addf %80, %81 : vector<2x64xf32>
    %83 = math.tanh %82 : vector<2x64xf32>
    %84 = arith.mulf %79, %83 : vector<2x64xf32>
    %85 = vector.extract_strided_slice %7 {offsets = [6, 0], sizes = [2, 256], strides = [1, 1]} : vector<16x256xf32> to vector<2x256xf32>
    %86 = arith.truncf %84 : vector<2x64xf32> to vector<2x64xbf16>
    %cst_19 = arith.constant dense<0.000000e+00> : vector<2x256xf32>
    %87 = tpu.matmul %86, %0, %cst_19 {dimension_numbers = #tpu.dot_dimension_numbers<[1], [0], [0], [1], [0, 0, 1, 1], [], []>} : vector<2x64xbf16>, vector<64x256xbf16>, vector<2x256xf32> -> vector<2x256xf32>
    %88 = arith.addf %85, %87 : vector<2x256xf32>
    %89 = arith.mulf %88, %16 : vector<2x256xf32>
    %90 = arith.negf %89 : vector<2x256xf32>
    %91 = math.exp %90 : vector<2x256xf32>
    %cst_20 = arith.constant 1.000000e+00 : f32
    %92 = vector.broadcast %cst_20 : f32 to vector<2x256xf32>
    %93 = arith.addf %92, %91 : vector<2x256xf32>
    %94 = arith.divf %92, %93 : vector<2x256xf32>
    %95 = arith.mulf %94, %16 : vector<2x256xf32>
    %96 = arith.subf %95, %19 : vector<2x256xf32>
    %97 = vector.extract_strided_slice %96 {offsets = [0, 0], sizes = [2, 64], strides = [1, 1]} : vector<2x256xf32> to vector<2x64xf32>
    %98 = vector.extract_strided_slice %96 {offsets = [0, 64], sizes = [2, 64], strides = [1, 1]} : vector<2x256xf32> to vector<2x64xf32>
    %99 = vector.extract_strided_slice %96 {offsets = [0, 128], sizes = [2, 64], strides = [1, 1]} : vector<2x256xf32> to vector<2x64xf32>
    %100 = vector.extract_strided_slice %96 {offsets = [0, 192], sizes = [2, 64], strides = [1, 1]} : vector<2x256xf32> to vector<2x64xf32>
    %101 = arith.mulf %98, %82 : vector<2x64xf32>
    %102 = arith.mulf %97, %99 : vector<2x64xf32>
    %103 = arith.addf %101, %102 : vector<2x64xf32>
    %104 = math.tanh %103 : vector<2x64xf32>
    %105 = arith.mulf %100, %104 : vector<2x64xf32>
    %106 = vector.extract_strided_slice %7 {offsets = [8, 0], sizes = [2, 256], strides = [1, 1]} : vector<16x256xf32> to vector<2x256xf32>
    %107 = arith.truncf %105 : vector<2x64xf32> to vector<2x64xbf16>
    %cst_21 = arith.constant dense<0.000000e+00> : vector<2x256xf32>
    %108 = tpu.matmul %107, %0, %cst_21 {dimension_numbers = #tpu.dot_dimension_numbers<[1], [0], [0], [1], [0, 0, 1, 1], [], []>} : vector<2x64xbf16>, vector<64x256xbf16>, vector<2x256xf32> -> vector<2x256xf32>
    %109 = arith.addf %106, %108 : vector<2x256xf32>
    %110 = arith.mulf %109, %16 : vector<2x256xf32>
    %111 = arith.negf %110 : vector<2x256xf32>
    %112 = math.exp %111 : vector<2x256xf32>
    %cst_22 = arith.constant 1.000000e+00 : f32
    %113 = vector.broadcast %cst_22 : f32 to vector<2x256xf32>
    %114 = arith.addf %113, %112 : vector<2x256xf32>
    %115 = arith.divf %113, %114 : vector<2x256xf32>
    %116 = arith.mulf %115, %16 : vector<2x256xf32>
    %117 = arith.subf %116, %19 : vector<2x256xf32>
    %118 = vector.extract_strided_slice %117 {offsets = [0, 0], sizes = [2, 64], strides = [1, 1]} : vector<2x256xf32> to vector<2x64xf32>
    %119 = vector.extract_strided_slice %117 {offsets = [0, 64], sizes = [2, 64], strides = [1, 1]} : vector<2x256xf32> to vector<2x64xf32>
    %120 = vector.extract_strided_slice %117 {offsets = [0, 128], sizes = [2, 64], strides = [1, 1]} : vector<2x256xf32> to vector<2x64xf32>
    %121 = vector.extract_strided_slice %117 {offsets = [0, 192], sizes = [2, 64], strides = [1, 1]} : vector<2x256xf32> to vector<2x64xf32>
    %122 = arith.mulf %119, %103 : vector<2x64xf32>
    %123 = arith.mulf %118, %120 : vector<2x64xf32>
    %124 = arith.addf %122, %123 : vector<2x64xf32>
    %125 = math.tanh %124 : vector<2x64xf32>
    %126 = arith.mulf %121, %125 : vector<2x64xf32>
    %127 = vector.extract_strided_slice %7 {offsets = [10, 0], sizes = [2, 256], strides = [1, 1]} : vector<16x256xf32> to vector<2x256xf32>
    %128 = arith.truncf %126 : vector<2x64xf32> to vector<2x64xbf16>
    %cst_23 = arith.constant dense<0.000000e+00> : vector<2x256xf32>
    %129 = tpu.matmul %128, %0, %cst_23 {dimension_numbers = #tpu.dot_dimension_numbers<[1], [0], [0], [1], [0, 0, 1, 1], [], []>} : vector<2x64xbf16>, vector<64x256xbf16>, vector<2x256xf32> -> vector<2x256xf32>
    %130 = arith.addf %127, %129 : vector<2x256xf32>
    %131 = arith.mulf %130, %16 : vector<2x256xf32>
    %132 = arith.negf %131 : vector<2x256xf32>
    %133 = math.exp %132 : vector<2x256xf32>
    %cst_24 = arith.constant 1.000000e+00 : f32
    %134 = vector.broadcast %cst_24 : f32 to vector<2x256xf32>
    %135 = arith.addf %134, %133 : vector<2x256xf32>
    %136 = arith.divf %134, %135 : vector<2x256xf32>
    %137 = arith.mulf %136, %16 : vector<2x256xf32>
    %138 = arith.subf %137, %19 : vector<2x256xf32>
    %139 = vector.extract_strided_slice %138 {offsets = [0, 0], sizes = [2, 64], strides = [1, 1]} : vector<2x256xf32> to vector<2x64xf32>
    %140 = vector.extract_strided_slice %138 {offsets = [0, 64], sizes = [2, 64], strides = [1, 1]} : vector<2x256xf32> to vector<2x64xf32>
    %141 = vector.extract_strided_slice %138 {offsets = [0, 128], sizes = [2, 64], strides = [1, 1]} : vector<2x256xf32> to vector<2x64xf32>
    %142 = vector.extract_strided_slice %138 {offsets = [0, 192], sizes = [2, 64], strides = [1, 1]} : vector<2x256xf32> to vector<2x64xf32>
    %143 = arith.mulf %140, %124 : vector<2x64xf32>
    %144 = arith.mulf %139, %141 : vector<2x64xf32>
    %145 = arith.addf %143, %144 : vector<2x64xf32>
    %146 = math.tanh %145 : vector<2x64xf32>
    %147 = arith.mulf %142, %146 : vector<2x64xf32>
    %148 = vector.extract_strided_slice %7 {offsets = [12, 0], sizes = [2, 256], strides = [1, 1]} : vector<16x256xf32> to vector<2x256xf32>
    %149 = arith.truncf %147 : vector<2x64xf32> to vector<2x64xbf16>
    %cst_25 = arith.constant dense<0.000000e+00> : vector<2x256xf32>
    %150 = tpu.matmul %149, %0, %cst_25 {dimension_numbers = #tpu.dot_dimension_numbers<[1], [0], [0], [1], [0, 0, 1, 1], [], []>} : vector<2x64xbf16>, vector<64x256xbf16>, vector<2x256xf32> -> vector<2x256xf32>
    %151 = arith.addf %148, %150 : vector<2x256xf32>
    %152 = arith.mulf %151, %16 : vector<2x256xf32>
    %153 = arith.negf %152 : vector<2x256xf32>
    %154 = math.exp %153 : vector<2x256xf32>
    %cst_26 = arith.constant 1.000000e+00 : f32
    %155 = vector.broadcast %cst_26 : f32 to vector<2x256xf32>
    %156 = arith.addf %155, %154 : vector<2x256xf32>
    %157 = arith.divf %155, %156 : vector<2x256xf32>
    %158 = arith.mulf %157, %16 : vector<2x256xf32>
    %159 = arith.subf %158, %19 : vector<2x256xf32>
    %160 = vector.extract_strided_slice %159 {offsets = [0, 0], sizes = [2, 64], strides = [1, 1]} : vector<2x256xf32> to vector<2x64xf32>
    %161 = vector.extract_strided_slice %159 {offsets = [0, 64], sizes = [2, 64], strides = [1, 1]} : vector<2x256xf32> to vector<2x64xf32>
    %162 = vector.extract_strided_slice %159 {offsets = [0, 128], sizes = [2, 64], strides = [1, 1]} : vector<2x256xf32> to vector<2x64xf32>
    %163 = vector.extract_strided_slice %159 {offsets = [0, 192], sizes = [2, 64], strides = [1, 1]} : vector<2x256xf32> to vector<2x64xf32>
    %164 = arith.mulf %161, %145 : vector<2x64xf32>
    %165 = arith.mulf %160, %162 : vector<2x64xf32>
    %166 = arith.addf %164, %165 : vector<2x64xf32>
    %167 = math.tanh %166 : vector<2x64xf32>
    %168 = arith.mulf %163, %167 : vector<2x64xf32>
    %169 = vector.extract_strided_slice %7 {offsets = [14, 0], sizes = [2, 256], strides = [1, 1]} : vector<16x256xf32> to vector<2x256xf32>
    %170 = arith.truncf %168 : vector<2x64xf32> to vector<2x64xbf16>
    %cst_27 = arith.constant dense<0.000000e+00> : vector<2x256xf32>
    %171 = tpu.matmul %170, %0, %cst_27 {dimension_numbers = #tpu.dot_dimension_numbers<[1], [0], [0], [1], [0, 0, 1, 1], [], []>} : vector<2x64xbf16>, vector<64x256xbf16>, vector<2x256xf32> -> vector<2x256xf32>
    %172 = arith.addf %169, %171 : vector<2x256xf32>
    %173 = arith.mulf %172, %16 : vector<2x256xf32>
    %174 = arith.negf %173 : vector<2x256xf32>
    %175 = math.exp %174 : vector<2x256xf32>
    %cst_28 = arith.constant 1.000000e+00 : f32
    %176 = vector.broadcast %cst_28 : f32 to vector<2x256xf32>
    %177 = arith.addf %176, %175 : vector<2x256xf32>
    %178 = arith.divf %176, %177 : vector<2x256xf32>
    %179 = arith.mulf %178, %16 : vector<2x256xf32>
    %180 = arith.subf %179, %19 : vector<2x256xf32>
    %181 = vector.extract_strided_slice %180 {offsets = [0, 0], sizes = [2, 64], strides = [1, 1]} : vector<2x256xf32> to vector<2x64xf32>
    %182 = vector.extract_strided_slice %180 {offsets = [0, 64], sizes = [2, 64], strides = [1, 1]} : vector<2x256xf32> to vector<2x64xf32>
    %183 = vector.extract_strided_slice %180 {offsets = [0, 128], sizes = [2, 64], strides = [1, 1]} : vector<2x256xf32> to vector<2x64xf32>
    %184 = vector.extract_strided_slice %180 {offsets = [0, 192], sizes = [2, 64], strides = [1, 1]} : vector<2x256xf32> to vector<2x64xf32>
    %185 = arith.mulf %182, %166 : vector<2x64xf32>
    %186 = arith.mulf %181, %183 : vector<2x64xf32>
    %187 = arith.addf %185, %186 : vector<2x64xf32>
    %188 = math.tanh %187 : vector<2x64xf32>
    %189 = arith.mulf %184, %188 : vector<2x64xf32>
    %c0_29 = arith.constant 0 : index
    %c0_30 = arith.constant 0 : index
    %190 = vector.load %arg4[%c0_29, %c0_30] : memref<1x64xf32, #tpu.memory_space<vmem>>, vector<1x64xf32>
    %191 = vector.broadcast %190 : vector<1x64xf32> to vector<2x64xf32>
    %192 = arith.mulf %189, %191 : vector<2x64xf32>
    %cst_31 = arith.constant dense<0.000000e+00> : vector<2xf32>
    %193 = vector.multi_reduction <add>, %192, %cst_31 [1] : vector<2x64xf32> to vector<2xf32>
    %194 = vector.shape_cast %193 : vector<2xf32> to vector<2x1xf32>
    %c0_32 = arith.constant 0 : index
    %c0_33 = arith.constant 0 : index
    %195 = vector.load %arg5[%c0_32, %c0_33] : memref<1x1xf32, #tpu.memory_space<vmem>>, vector<1x1xf32>
    %196 = vector.broadcast %195 : vector<1x1xf32> to vector<2x1xf32>
    %197 = arith.addf %194, %196 : vector<2x1xf32>
    %198 = vector.shape_cast %197 : vector<2x1xf32> to vector<2x1xf32>
    %199 = vector.broadcast %198 : vector<2x1xf32> to vector<2x64xf32>
    %200 = tpu.concatenate %189, %199 in 1 : vector<2x64xf32>, vector<2x64xf32> -> vector<2x128xf32>
    %c0_34 = arith.constant 0 : index
    %c0_35 = arith.constant 0 : index
    %201 = vector.load %arg6[%c0_34, %c0_35] : memref<2x128xf32, #tpu.memory_space<vmem>>, vector<2x128xf32>
    tpu.vector_store %arg6[%c0_34, %c0_35], %200 {strides = array<i32>} : memref<2x128xf32, #tpu.memory_space<vmem>>, vector<2x128xf32>,
    return
  }
}

</mosaic_0001>

<bundles_post_ra>
// kernel: tpu_custom_call.1
= control target key start
LH: loop header
LB: loop body
LE: loop exit
PB: predicated region body
PF: predicated region fallthrough
CT: control target
= control target key end

     0   :  { %s1348_s0 = inlined_call_operand.vmem [shape: f32[16,8], index: 0, kind: input, shape index: {}]   ;;  %s1349_s1 = inlined_call_operand.vmem [shape: bf16[8,256], index: 1, kind: input, shape index: {}]   ;;  %s1350_s2 = inlined_call_operand.hbm [shape: bf16[64,256], index: 2, kind: input, shape index: {}]   ;;  %s1351_s3 = inlined_call_operand.vmem [shape: f32[1,256], index: 3, kind: input, shape index: {}]   ;;  %s1352_s4 = inlined_call_operand.vmem [shape: f32[1,64], index: 4, kind: input, shape index: {}]   ;;  %s1353_s5 = inlined_call_operand.<no memory space> [shape: f32[1,1], index: 5, kind: input, shape index: {}]   ;;  %s1354_s6 = inlined_call_operand.hbm [shape: f32[2,128], index: 6, kind: output, shape index: {}]  }
   0x1   :  { %v11_v0 = vstv %s1353_s5 }
   0x2   :  { %12 = vst [vmem:[#allocation2] sm:$0x1] %v11_v0 }
   0x3   :  { %13 = vsyncpa [#allocation4], 0 }
   0x4   :  { %14 = vsyncpa [#allocation5], 0  ;;  %s1092_s23 = smov [#allocation3]   ;;  %s1044_s27 = scalar_lea.hbm %s1350_s2, 1024 }
   0x5   :  { %s24_s24 = sshll.u32 %s1092_s23, 4  ;;  %p1045_p0 = scmp.ne.s32.totalorder %s1350_s2, %s1044_s27  ;;  %s25_s24 = int_to_ptr.vmem [resolvable:$true] %s24_s24 }
   0x6   :  { %p1048_p1 = scmp.lt.u32.totalorder %s1044_s27, %s1350_s2 }
   0x8   :  { %p1050_p2 = pnand %p1048_p1, %p1045_p0 }
   0xa   :  { %1053 = shalt.err (!%p1050_p2)
}
   0xb   :  { %s1054_s5 = scalar_lea.vmem %s25_s24, 1024  ;;  %p1059_p4 = scmp.lt.s32.totalorder %s25_s24, %s25_s24 }
   0xc   :  { %p1055_p3 = scmp.ne.s32.totalorder %s25_s24, %s1054_s5  ;;  %p1060_p5 = scmp.lt.s32.totalorder %s1054_s5, %s1054_s5 }
   0xe   :  { %p1061_p6 = por %p1060_p5, %p1059_p4 }
  0x10   :  { %p1062_p7 = pnand %p1061_p6, %p1055_p3 }
  0x12   :  { %1065 = shalt.err (!%p1062_p7)
}
  0x13   :  { %s1093_s8 = smov 128   ;;  %s1094_s9 = smov 8  }
  0x14   :  { %30 = dma.hbm_to_vmem [thread:$0]  %s1350_s2, 1024, %s25_s24, [#allocation4], %s1093_s8, %s1093_s8, %s1094_s9  }
  0x15   :  { %1088 = dma.done.wait [#allocation4], 1024  }
  0x16   :  { %1089 = vsyncadd [#allocation4], 4294966272  ;;  %v1095_v1 = vmov 0   ;;  %v1153_v2 = vld [vmem:[#allocation3 + $0x4] ss:$8 sps:$4 sm:$0xff]   ;;  %vm74_vm0 = vcmask 1043456   ;;  %v55_v17 = vlaneseq }
  0x17   :  { %113 = vmatprep.mubr.bf16.mxu0 %v1095_v1  ;;  %213 = vmatprep.mubr.bf16.mxu1 %v1095_v1  ;;  %v1155_v3 = vld [vmem:[#allocation3] ss:$8 sps:$4 sm:$0xff]   ;;  %v1158_v4 = vld [vmem:[#allocation3 + $0x14] ss:$8 sps:$4 sm:$0xff]   ;;  %v1164_v6 = vld [vmem:[#allocation3 + $0x10] ss:$8 sps:$4 sm:$0xff]  }
  0x18   :  { %949 = vset.pattern.permute.xlu0 %v1095_v1  ;;  %181 = vmatprep.subr.bf16.mxu1 %v1153_v2  ;;  %v52_v5 = vld [vmem:[%s1349_s1] sm:$0xff]  ;;  %v50_v11 = vld [vmem:[%s1348_s0 + $0x8] sm:$0xff]  ;;  %vm70_vm1 = vcmask 64512   ;;  %v1185_v16 = vld [vmem:[#allocation3 + $0x30] ss:$8 sps:$4 sm:$0xff]   ;;  %v56_v18 = vshrl.u32 %v55_v17, 7 }
  0x19   :  { %182 = vmatpush1.bf16.msra.mxu1 %v1155_v3  ;;  %v905_v7 = vcombine.high %v52_v5, %v52_v5  ;;  %v904_v8 = vcombine.low %v52_v5, %v52_v5  ;;  %v1167_v9 = vld [vmem:[#allocation3 + $0x24] ss:$8 sps:$4 sm:$0xff]   ;;  %v1176_v14 = vld [vmem:[#allocation3 + $0x20] ss:$8 sps:$4 sm:$0xff]   ;;  %v1180_v15 = vld [vmem:[#allocation3 + $0x34] ss:$8 sps:$4 sm:$0xff]  }
  0x1a   :  { %183 = vmatprep.subr.bf16.mxu1 %v1158_v4  ;;  %v49_v10 = vld [vmem:[%s1348_s0] sm:$0xff]  ;;  %v57_v19 = vsub.s32 0, %v56_v18  ;;  %v61_v21 = vsub.s32 1, %v56_v18  ;;  %v125_v23 = vand.u32 127, %v55_v17  ;;  %v1096_v35 = vmov 1.0  }
  0x1b   :  { %906 = vmatprep.subr.msk.bf16.mxu0 %vm74_vm0, %v905_v7  ;;  %v76_v12 = vsel %vm74_vm0, %v904_v8, 0  ;;  %v51_v13 = vpack.c.bf16 %v50_v11, %v49_v10  ;;  %v53_v20 = vld [vmem:[%s1351_s3] sm:$0x3]  ;;  %v1097_v50 = vmov 0.0   ;;  %s1098_s3 = smov 64   ;;  %vm177_vm3 = vcmask 523264  }
  0x1c   :  { %82 = vmatpush1.bf16.msra.mxu0 %v76_v12  ;;  %v58_v22 = vrot.slane %v53_v20, %v57_v19  ;;  %v62_v25 = vrot.slane %v53_v20, %v61_v21  ;;  %v126_v28 = vadd.s32 128, %v125_v23  ;;  %vm866_vm4 = vcmask 523270  }
  0x1d   :  { %184 = vmatpush1.bf16.msra.mxu1 %v1164_v6  ;;  %258 = vmatprep.subr.bf16.mxu0 %v1153_v2 }
  0x1e   :  { %185 = vmatprep.subr.bf16.mxu1 %v1167_v9  ;;  %vm130_vm2 = vcmp.lt.s32.totalorder %v126_v28, 192 }
  0x1f   :  { %907 = vmatmul.mubr.msk.bf16.vlgmr.msra.gmra.mrb[0].mxu0 %vm70_vm1, %v51_v13  ;;  %v1219_v36 = vsel %vm130_vm2, 2.0, %v1096_v35  ;;  %v1225_v51 = vsel %vm130_vm2, 1.0, %v1097_v50 }
  0x20   :  { %259 = vmatpush1.bf16.msra.mxu0 %v1155_v3  ;;  %290 = vmatprep.mubr.bf16.mxu0 %v1095_v1 }
  0x21   :  { %186 = vmatpush1.bf16.msra.mxu1 %v1176_v14  ;;  %260 = vmatprep.subr.bf16.mxu0 %v1158_v4 }
  0x22   :  { %187 = vmatprep.subr.bf16.mxu1 %v1180_v15 }
  0x24   :  { %261 = vmatpush1.bf16.msra.mxu0 %v1164_v6 }
  0x25   :  { %188 = vmatpush1.bf16.msra.mxu1 %v1185_v16  ;;  %262 = vmatprep.subr.bf16.mxu0 %v1167_v9 }
  0x26   :  { %345 = vmatprep.subr.bf16.mxu1 %v1153_v2 }
  0x28   :  { %214 = vmatmul.mubr.bf16.vlgmr.msra.gmra.mrb[0].mxu1 %v1095_v1  ;;  %263 = vmatpush1.bf16.msra.mxu0 %v1176_v14 }
  0x29   :  { %264 = vmatprep.subr.bf16.mxu0 %v1180_v15  ;;  %346 = vmatpush1.bf16.msra.mxu1 %v1155_v3 }
  0x2a   :  { %347 = vmatprep.subr.bf16.mxu1 %v1158_v4  ;;  %377 = vmatprep.mubr.bf16.mxu1 %v1095_v1 }
  0x2c   :  { %265 = vmatpush1.bf16.msra.mxu0 %v1185_v16 }
  0x2d   :  { %348 = vmatpush1.bf16.msra.mxu1 %v1164_v6  ;;  %432 = vmatprep.subr.bf16.mxu0 %v1153_v2 }
  0x2e   :  { %349 = vmatprep.subr.bf16.mxu1 %v1167_v9 }
  0x31   :  { %350 = vmatpush1.bf16.msra.mxu1 %v1176_v14 }
  0x32   :  { %351 = vmatprep.subr.bf16.mxu1 %v1180_v15 }
  0x35   :  { %352 = vmatpush1.bf16.msra.mxu1 %v1185_v16 }
  0x36   :  { %519 = vmatprep.subr.bf16.mxu1 %v1153_v2 }
  0xf2   :  { %v115_v24 = vpop.f32.mrb[0].mxu0 }
  0xf3   :  { %v117_v26 = vpop.f32.mrb[1].mxu0  ;;  %v1214_v32 = vadd.f32 %v115_v24, %v58_v22 }
  0xf4   :  { %v119_v27 = vpop.f32.mrb[2].mxu0  ;;  %v1216_v33 = vadd.f32 %v117_v26, %v62_v25 }
  0xf5   :  { %v1210_v29 = vadd.f32 %v119_v27, %v58_v22  ;;  %v121_v30 = vpop.f32.mrb[3].mxu0 }
  0xf6   :  { %v1212_v31 = vadd.f32 %v121_v30, %v62_v25 }
  0xfb   :  { %v215_v34 = vpop.f32.mrb[0].mxu1 }
  0xfc   :  { %v222_v37 = vadd.f32 %v215_v34, %v1214_v32  ;;  %v217_v38 = vpop.f32.mrb[1].mxu1 }
  0xfd   :  { %v223_v39 = vadd.f32 %v217_v38, %v1216_v33  ;;  %v219_v40 = vpop.f32.mrb[2].mxu1 }
  0xfe   :  { %v916_v41 = vmul.f32 -1.442695, %v222_v37  ;;  %v220_v42 = vpop.f32.mrb[3].mxu1 }
  0xff   :  { %v225_v43 = vmul.f32 %v223_v39, %v1219_v36 }
 0x100   :  { %964 = vpow2.f32 %v916_v41 }
 0x101   :  { %v917_v44 = vmul.f32 -1.442695, %v225_v43 }
 0x103   :  { %966 = vpow2.f32 %v917_v44 }
 0x10a   :  { %v965_v45 = vpop.eup %964 }
 0x10b   :  { %v232_v48 = vadd.f32 1.0, %v965_v45 }
 0x10d   :  { %v967_v46 = vpop.eup %966 }
 0x10e   :  { %v233_v47 = vadd.f32 1.0, %v967_v46 }
 0x110   :  { %968 = vrcp.f32 %v233_v47 }
 0x111   :  { %970 = vrcp.f32 %v232_v48 }
 0x11a   :  { %v969_v49 = vpop.eup %968 }
 0x11b   :  { %v239_v52 = vmul.f32 %v969_v49, %v1219_v36  ;;  %v971_v54 = vpop.eup %970 }
 0x11c   :  { %v242_v56 = vmul.f32 0.0, %v971_v54 }
 0x11d   :  { %v241_v53 = vsub.f32 %v239_v52, %v1225_v51 }
 0x11f   :  { %v243_v55 = vmul.f32 %v971_v54, %v241_v53 }
 0x121   :  { %245 = vrot.lane.b32.xlu0 %v243_v55, %s1098_s3 }
 0x193   :  { %v246_v57 = vpop.permute.xlu0 %245 }
 0x194   :  { %v248_v58 = vadd.f32 %v246_v57, %v242_v56 }
 0x196   :  { %972 = vtanh.f32 %v248_v58  ;;  %v326_v23 = vrot.slane %v248_v58, 6 }
 0x1a0   :  { %v973_v59 = vpop.eup %972 }
 0x1a1   :  { %v250_v60 = vmul.f32 %v973_v59, %v241_v53 }
 0x1a3   :  { %v251_v61 = vpack.c.bf16 %v250_v60, %v250_v60 }
 0x1a5   :  { %253 = vrot.lane.b32.xlu0 %v251_v61, %s1098_s3 }
 0x217   :  { %v254_v62 = vpop.permute.xlu0 %253 }
 0x218   :  { %918 = vmatmul.mubr.msk.bf16.vlgmr.msra.gmra.mrb[4].mxu0 %vm177_vm3, %v254_v62 }
 0x219   :  { %433 = vmatpush1.bf16.msra.mxu0 %v1155_v3  ;;  %464 = vmatprep.mubr.bf16.mxu0 %v1095_v1 }
 0x21a   :  { %434 = vmatprep.subr.bf16.mxu0 %v1158_v4 }
 0x21d   :  { %435 = vmatpush1.bf16.msra.mxu0 %v1164_v6 }
 0x21e   :  { %436 = vmatprep.subr.bf16.mxu0 %v1167_v9 }
 0x221   :  { %437 = vmatpush1.bf16.msra.mxu0 %v1176_v14 }
 0x222   :  { %438 = vmatprep.subr.bf16.mxu0 %v1180_v15 }
 0x225   :  { %439 = vmatpush1.bf16.msra.mxu0 %v1185_v16 }
 0x226   :  { %599 = vmatprep.subr.bf16.mxu0 %v1153_v2 }
 0x2eb   :  { %v292_v63 = vpop.f32.mrb[4].mxu0 }
 0x2ec   :  { %v301_v0 = vrot.slane %v292_v63, 6  ;;  %v294_v5 = vpop.f32.mrb[5].mxu0 }
 0x2ed   :  { %v302_v7 = vrot.slane %v294_v5, 6  ;;  %v296_v8 = vpop.f32.mrb[6].mxu0 }
 0x2ee   :  { %v305_v10 = vadd.f32 %v301_v0, %v1214_v32  ;;  %v297_v11 = vpop.f32.mrb[7].mxu0 }
 0x2ef   :  { %v306_v12 = vadd.f32 %v302_v7, %v1216_v33 }
 0x2f0   :  { %v919_v13 = vmul.f32 -1.442695, %v305_v10 }
 0x2f1   :  { %v308_v17 = vmul.f32 %v306_v12, %v1219_v36 }
 0x2f2   :  { %974 = vpow2.f32 %v919_v13 }
 0x2f3   :  { %v920_v18 = vmul.f32 -1.442695, %v308_v17 }
 0x2f5   :  { %976 = vpow2.f32 %v920_v18 }
 0x2fc   :  { %v975_v19 = vpop.eup %974 }
 0x2fd   :  { %v315_v20 = vadd.f32 1.0, %v975_v19 }
 0x2ff   :  { %v977_v21 = vpop.eup %976  ;;  %978 = vrcp.f32 %v315_v20 }
 0x300   :  { %v316_v22 = vadd.f32 1.0, %v977_v21 }
 0x302   :  { %980 = vrcp.f32 %v316_v22 }
 0x309   :  { %v979_v24 = vpop.eup %978 }
 0x30a   :  { %v328_v25 = vmul.f32 %v979_v24, %v326_v23 }
 0x30c   :  { %v981_v26 = vpop.eup %980 }
 0x30d   :  { %v322_v27 = vmul.f32 %v981_v26, %v1219_v36 }
 0x30f   :  { %v324_v28 = vsub.f32 %v322_v27, %v1225_v51 }
 0x311   :  { %v329_v30 = vmul.f32 %v979_v24, %v324_v28 }
 0x313   :  { %331 = vrot.lane.b32.xlu1 %v329_v30, %s1098_s3 }
 0x385   :  { %v332_v34 = vpop.permute.xlu1 %331 }
 0x386   :  { %v334_v35 = vadd.f32 %v332_v34, %v328_v25 }
 0x388   :  { %982 = vtanh.f32 %v334_v35  ;;  %v413_v58 = vrot.slane %v334_v35, 6 }
 0x392   :  { %v983_v37 = vpop.eup %982 }
 0x393   :  { %v336_v38 = vmul.f32 %v983_v37, %v324_v28 }
 0x395   :  { %v337_v39 = vpack.c.bf16 %v336_v38, %v336_v38 }
 0x397   :  { %v339_v40 = vrot.slane %v337_v39, 1 }
 0x399   :  { %340 = vrot.lane.b32.xlu1 %v339_v40, %s1098_s3 }
 0x40b   :  { %v341_v41 = vpop.permute.xlu1 %340 }
 0x40c   :  { %921 = vmatmul.mubr.msk.bf16.vlgmr.msra.gmra.mrb[4].mxu1 %vm177_vm3, %v341_v41 }
 0x40d   :  { %520 = vmatpush1.bf16.msra.mxu1 %v1155_v3  ;;  %551 = vmatprep.mubr.bf16.mxu1 %v1095_v1 }
 0x40e   :  { %521 = vmatprep.subr.bf16.mxu1 %v1158_v4 }
 0x411   :  { %522 = vmatpush1.bf16.msra.mxu1 %v1164_v6 }
 0x412   :  { %523 = vmatprep.subr.bf16.mxu1 %v1167_v9 }
 0x415   :  { %524 = vmatpush1.bf16.msra.mxu1 %v1176_v14 }
 0x416   :  { %525 = vmatprep.subr.bf16.mxu1 %v1180_v15 }
 0x419   :  { %526 = vmatpush1.bf16.msra.mxu1 %v1185_v16 }
 0x41a   :  { %686 = vmatprep.subr.bf16.mxu1 %v1153_v2 }
 0x4df   :  { %v379_v42 = vpop.f32.mrb[4].mxu1 }
 0x4e0   :  { %v388_v43 = vrot.slane %v379_v42, 4  ;;  %v381_v44 = vpop.f32.mrb[5].mxu1 }
 0x4e1   :  { %v389_v45 = vrot.slane %v381_v44, 4  ;;  %v383_v46 = vpop.f32.mrb[6].mxu1 }
 0x4e2   :  { %v392_v47 = vadd.f32 %v388_v43, %v1214_v32  ;;  %v384_v48 = vpop.f32.mrb[7].mxu1 }
 0x4e3   :  { %v393_v49 = vadd.f32 %v389_v45, %v1216_v33 }
 0x4e4   :  { %v922_v50 = vmul.f32 -1.442695, %v392_v47 }
 0x4e5   :  { %v395_v52 = vmul.f32 %v393_v49, %v1219_v36 }
 0x4e6   :  { %984 = vpow2.f32 %v922_v50 }
 0x4e7   :  { %v923_v53 = vmul.f32 -1.442695, %v395_v52 }
 0x4e9   :  { %986 = vpow2.f32 %v923_v53 }
 0x4f0   :  { %v985_v54 = vpop.eup %984 }
 0x4f1   :  { %v402_v55 = vadd.f32 1.0, %v985_v54 }
 0x4f3   :  { %v987_v56 = vpop.eup %986  ;;  %988 = vrcp.f32 %v402_v55 }
 0x4f4   :  { %v403_v57 = vadd.f32 1.0, %v987_v56 }
 0x4f6   :  { %990 = vrcp.f32 %v403_v57 }
 0x4fd   :  { %v989_v59 = vpop.eup %988 }
 0x4fe   :  { %v415_v60 = vmul.f32 %v989_v59, %v413_v58 }
 0x500   :  { %v991_v61 = vpop.eup %990 }
 0x501   :  { %v409_v62 = vmul.f32 %v991_v61, %v1219_v36 }
 0x503   :  { %v411_v63 = vsub.f32 %v409_v62, %v1225_v51 }
 0x505   :  { %v416_v0 = vmul.f32 %v989_v59, %v411_v63 }
 0x507   :  { %418 = vrot.lane.b32.xlu0 %v416_v0, %s1098_s3 }
 0x579   :  { %v419_v5 = vpop.permute.xlu0 %418 }
 0x57a   :  { %v421_v7 = vadd.f32 %v419_v5, %v415_v60 }
 0x57c   :  { %992 = vtanh.f32 %v421_v7  ;;  %v500_v35 = vrot.slane %v421_v7, 6 }
 0x586   :  { %v993_v8 = vpop.eup %992 }
 0x587   :  { %v423_v10 = vmul.f32 %v993_v8, %v411_v63 }
 0x589   :  { %v424_v11 = vpack.c.bf16 %v423_v10, %v423_v10 }
 0x58b   :  { %v426_v12 = vrot.slane %v424_v11, 2 }
 0x58d   :  { %427 = vrot.lane.b32.xlu1 %v426_v12, %s1098_s3 }
 0x5ff   :  { %v428_v13 = vpop.permute.xlu1 %427 }
 0x600   :  { %924 = vmatmul.mubr.msk.bf16.vlgmr.msra.gmra.mrb[8].mxu0 %vm177_vm3, %v428_v13 }
 0x601   :  { %600 = vmatpush1.bf16.msra.mxu0 %v1155_v3  ;;  %631 = vmatprep.mubr.bf16.mxu0 %v1095_v1 }
 0x602   :  { %601 = vmatprep.subr.bf16.mxu0 %v1158_v4 }
 0x605   :  { %602 = vmatpush1.bf16.msra.mxu0 %v1164_v6 }
 0x606   :  { %603 = vmatprep.subr.bf16.mxu0 %v1167_v9 }
 0x609   :  { %604 = vmatpush1.bf16.msra.mxu0 %v1176_v14 }
 0x60a   :  { %605 = vmatprep.subr.bf16.mxu0 %v1180_v15 }
 0x60d   :  { %606 = vmatpush1.bf16.msra.mxu0 %v1185_v16 }
 0x60e   :  { %773 = vmatprep.subr.bf16.mxu0 %v1153_v2 }
 0x6d3   :  { %v466_v17 = vpop.f32.mrb[8].mxu0 }
 0x6d4   :  { %v475_v18 = vrot.slane %v466_v17, 2  ;;  %v468_v19 = vpop.f32.mrb[9].mxu0 }
 0x6d5   :  { %v476_v20 = vrot.slane %v468_v19, 2  ;;  %v470_v21 = vpop.f32.mrb[10].mxu0 }
 0x6d6   :  { %v479_v22 = vadd.f32 %v475_v18, %v1214_v32  ;;  %v471_v23 = vpop.f32.mrb[11].mxu0 }
 0x6d7   :  { %v480_v24 = vadd.f32 %v476_v20, %v1216_v33 }
 0x6d8   :  { %v925_v25 = vmul.f32 -1.442695, %v479_v22 }
 0x6d9   :  { %v482_v26 = vmul.f32 %v480_v24, %v1219_v36 }
 0x6da   :  { %994 = vpow2.f32 %v925_v25 }
 0x6db   :  { %v926_v27 = vmul.f32 -1.442695, %v482_v26 }
 0x6dd   :  { %996 = vpow2.f32 %v926_v27 }
 0x6e4   :  { %v995_v28 = vpop.eup %994 }
 0x6e5   :  { %v489_v30 = vadd.f32 1.0, %v995_v28 }
 0x6e7   :  { %v997_v34 = vpop.eup %996  ;;  %998 = vrcp.f32 %v489_v30 }
 0x6e8   :  { %v490_v2 = vadd.f32 1.0, %v997_v34 }
 0x6ea   :  { %1000 = vrcp.f32 %v490_v2 }
 0x6f1   :  { %v999_v37 = vpop.eup %998 }
 0x6f2   :  { %v502_v38 = vmul.f32 %v999_v37, %v500_v35 }
 0x6f4   :  { %v1001_v39 = vpop.eup %1000 }
 0x6f5   :  { %v496_v32 = vmul.f32 %v1001_v39, %v1219_v36 }
 0x6f7   :  { %v498_v33 = vsub.f32 %v496_v32, %v1225_v51 }
 0x6f9   :  { %v503_v40 = vmul.f32 %v999_v37, %v498_v33 }
 0x6fb   :  { %505 = vrot.lane.b32.xlu0 %v503_v40, %s1098_s3 }
 0x76d   :  { %v506_v41 = vpop.permute.xlu0 %505 }
 0x76e   :  { %v508_v42 = vadd.f32 %v506_v41, %v502_v38 }
 0x770   :  { %1002 = vtanh.f32 %v508_v42  ;;  %v581_v62 = vrot.slane %v508_v42, 6 }
 0x77a   :  { %v1003_v43 = vpop.eup %1002 }
 0x77b   :  { %v510_v44 = vmul.f32 %v1003_v43, %v498_v33 }
 0x77d   :  { %v511_v45 = vpack.c.bf16 %v510_v44, %v510_v44 }
 0x77f   :  { %v513_v46 = vrot.slane %v511_v45, 3 }
 0x781   :  { %514 = vrot.lane.b32.xlu1 %v513_v46, %s1098_s3 }
 0x7f3   :  { %v515_v47 = vpop.permute.xlu1 %514 }
 0x7f4   :  { %927 = vmatmul.mubr.msk.bf16.vlgmr.msra.gmra.mrb[8].mxu1 %vm177_vm3, %v515_v47 }
 0x7f5   :  { %687 = vmatpush1.bf16.msra.mxu1 %v1155_v3  ;;  %718 = vmatprep.mubr.bf16.mxu1 %v1095_v1 }
 0x7f6   :  { %688 = vmatprep.subr.bf16.mxu1 %v1158_v4 }
 0x7f9   :  { %689 = vmatpush1.bf16.msra.mxu1 %v1164_v6 }
 0x7fa   :  { %690 = vmatprep.subr.bf16.mxu1 %v1167_v9 }
 0x7fd   :  { %691 = vmatpush1.bf16.msra.mxu1 %v1176_v14 }
 0x7fe   :  { %692 = vmatprep.subr.bf16.mxu1 %v1180_v15 }
 0x801   :  { %693 = vmatpush1.bf16.msra.mxu1 %v1185_v16 }
 0x8c7   :  { %v553_v48 = vpop.f32.mrb[8].mxu1 }
 0x8c8   :  { %v560_v49 = vadd.f32 %v553_v48, %v1210_v29  ;;  %v555_v50 = vpop.f32.mrb[9].mxu1 }
 0x8c9   :  { %v561_v52 = vadd.f32 %v555_v50, %v1212_v31  ;;  %v557_v53 = vpop.f32.mrb[10].mxu1 }
 0x8ca   :  { %v928_v54 = vmul.f32 -1.442695, %v560_v49  ;;  %v558_v55 = vpop.f32.mrb[11].mxu1 }
 0x8cb   :  { %v563_v56 = vmul.f32 %v561_v52, %v1219_v36 }
 0x8cc   :  { %1004 = vpow2.f32 %v928_v54 }
 0x8cd   :  { %v929_v57 = vmul.f32 -1.442695, %v563_v56 }
 0x8cf   :  { %1006 = vpow2.f32 %v929_v57 }
 0x8d6   :  { %v1005_v58 = vpop.eup %1004 }
 0x8d7   :  { %v570_v59 = vadd.f32 1.0, %v1005_v58 }
 0x8d9   :  { %v1007_v60 = vpop.eup %1006  ;;  %1008 = vrcp.f32 %v570_v59 }
 0x8da   :  { %v571_v61 = vadd.f32 1.0, %v1007_v60 }
 0x8dc   :  { %1010 = vrcp.f32 %v571_v61 }
 0x8e3   :  { %v1009_v63 = vpop.eup %1008 }
 0x8e4   :  { %v583_v0 = vmul.f32 %v1009_v63, %v581_v62 }
 0x8e6   :  { %v1011_v5 = vpop.eup %1010 }
 0x8e7   :  { %v577_v7 = vmul.f32 %v1011_v5, %v1219_v36 }
 0x8e9   :  { %v579_v8 = vsub.f32 %v577_v7, %v1225_v51 }
 0x8eb   :  { %v584_v10 = vmul.f32 %v1009_v63, %v579_v8 }
 0x8ed   :  { %586 = vrot.lane.b32.xlu0 %v584_v10, %s1098_s3 }
 0x95f   :  { %v587_v11 = vpop.permute.xlu0 %586 }
 0x960   :  { %v589_v12 = vadd.f32 %v587_v11, %v583_v0 }
 0x962   :  { %1012 = vtanh.f32 %v589_v12  ;;  %v667_v27 = vrot.slane %v589_v12, 6 }
 0x96c   :  { %v1013_v13 = vpop.eup %1012 }
 0x96d   :  { %v591_v17 = vmul.f32 %v1013_v13, %v579_v8 }
 0x96f   :  { %v592_v18 = vpack.c.bf16 %v591_v17, %v591_v17 }
 0x971   :  { %594 = vrot.lane.b32.xlu1 %v592_v18, %s1098_s3  ;;  %v939_v18 = vld [vmem:[%s1352_s4] ss:$0 sm:$0xff]  ;;  %s1099_s4 = smov [#allocation6]  }
 0x972   :  { %s895_s19 = sshll.u32 %s1099_s4, 4  ;;  %s896_s19 = int_to_ptr.vmem [resolvable:$true] %s895_s19 }
 0x973   :  { %s1066_s20 = scalar_lea.vmem %s896_s19, 32  ;;  %p1071_p9 = scmp.lt.s32.totalorder %s896_s19, %s896_s19 }
 0x974   :  { %p1067_p8 = scmp.ne.s32.totalorder %s896_s19, %s1066_s20  ;;  %p1072_p10 = scmp.lt.s32.totalorder %s1066_s20, %s1066_s20 }
 0x976   :  { %p1073_p11 = por %p1072_p10, %p1071_p9 }
 0x978   :  { %p1074_p12 = pnand %p1073_p11, %p1067_p8 }
 0x9e3   :  { %v595_v19 = vpop.permute.xlu1 %594 }
 0x9e4   :  { %930 = vmatmul.mubr.msk.bf16.vlgmr.msra.gmra.mrb[12].mxu0 %vm177_vm3, %v595_v19 }
 0x9e5   :  { %774 = vmatpush1.bf16.msra.mxu0 %v1155_v3  ;;  %805 = vmatprep.mubr.bf16.mxu0 %v1095_v1 }
 0x9e6   :  { %775 = vmatprep.subr.bf16.mxu0 %v1158_v4 }
 0x9e9   :  { %776 = vmatpush1.bf16.msra.mxu0 %v1164_v6 }
 0x9ea   :  { %777 = vmatprep.subr.bf16.mxu0 %v1167_v9 }
 0x9ed   :  { %778 = vmatpush1.bf16.msra.mxu0 %v1176_v14 }
 0x9ee   :  { %779 = vmatprep.subr.bf16.mxu0 %v1180_v15 }
 0x9f1   :  { %780 = vmatpush1.bf16.msra.mxu0 %v1185_v16 }
 0xab7   :  { %v633_v20 = vpop.f32.mrb[12].mxu0 }
 0xab8   :  { %v642_v21 = vrot.slane %v633_v20, 6  ;;  %v635_v22 = vpop.f32.mrb[13].mxu0 }
 0xab9   :  { %v643_v23 = vrot.slane %v635_v22, 6  ;;  %v637_v24 = vpop.f32.mrb[14].mxu0 }
 0xaba   :  { %v646_v3 = vadd.f32 %v642_v21, %v1210_v29  ;;  %v638_v1 = vpop.f32.mrb[15].mxu0 }
 0xabb   :  { %v647_v4 = vadd.f32 %v643_v23, %v1212_v31 }
 0xabc   :  { %v931_v25 = vmul.f32 -1.442695, %v646_v3 }
 0xabd   :  { %v649_v6 = vmul.f32 %v647_v4, %v1219_v36 }
 0xabe   :  { %1014 = vpow2.f32 %v931_v25 }
 0xabf   :  { %v932_v9 = vmul.f32 -1.442695, %v649_v6 }
 0xac1   :  { %1016 = vpow2.f32 %v932_v9 }
 0xac8   :  { %v1015_v14 = vpop.eup %1014 }
 0xac9   :  { %v656_v15 = vadd.f32 1.0, %v1015_v14 }
 0xacb   :  { %v1017_v26 = vpop.eup %1016  ;;  %1018 = vrcp.f32 %v656_v15 }
 0xacc   :  { %v657_v16 = vadd.f32 1.0, %v1017_v26 }
 0xace   :  { %1020 = vrcp.f32 %v657_v16 }
 0xad5   :  { %v1019_v28 = vpop.eup %1018 }
 0xad6   :  { %v669_v30 = vmul.f32 %v1019_v28, %v667_v27 }
 0xad8   :  { %v1021_v34 = vpop.eup %1020 }
 0xad9   :  { %v663_v2 = vmul.f32 %v1021_v34, %v1219_v36 }
 0xadb   :  { %v665_v35 = vsub.f32 %v663_v2, %v1225_v51 }
 0xadd   :  { %v670_v37 = vmul.f32 %v1019_v28, %v665_v35 }
 0xadf   :  { %672 = vrot.lane.b32.xlu0 %v670_v37, %s1098_s3 }
 0xb51   :  { %v673_v38 = vpop.permute.xlu0 %672 }
 0xb52   :  { %v675_v39 = vadd.f32 %v673_v38, %v669_v30 }
 0xb54   :  { %1022 = vtanh.f32 %v675_v39  ;;  %v754_v59 = vrot.slane %v675_v39, 6 }
 0xb5e   :  { %v1023_v32 = vpop.eup %1022 }
 0xb5f   :  { %v677_v33 = vmul.f32 %v1023_v32, %v665_v35 }
 0xb61   :  { %v678_v40 = vpack.c.bf16 %v677_v33, %v677_v33 }
 0xb63   :  { %v680_v41 = vrot.slane %v678_v40, 1 }
 0xb65   :  { %681 = vrot.lane.b32.xlu1 %v680_v41, %s1098_s3  ;;  %v940_v41 = vld [vmem:[#allocation2] ss:$0 sm:$0xff] }
 0xbd7   :  { %v682_v42 = vpop.permute.xlu1 %681 }
 0xbd8   :  { %933 = vmatmul.mubr.msk.bf16.vlgmr.msra.gmra.mrb[12].mxu1 %vm177_vm3, %v682_v42 }
 0xcab   :  { %v720_v43 = vpop.f32.mrb[12].mxu1 }
 0xcac   :  { %v729_v44 = vrot.slane %v720_v43, 4  ;;  %v722_v45 = vpop.f32.mrb[13].mxu1 }
 0xcad   :  { %v730_v46 = vrot.slane %v722_v45, 4  ;;  %v724_v47 = vpop.f32.mrb[14].mxu1 }
 0xcae   :  { %v733_v48 = vadd.f32 %v729_v44, %v1210_v29  ;;  %v725_v49 = vpop.f32.mrb[15].mxu1 }
 0xcaf   :  { %v734_v50 = vadd.f32 %v730_v46, %v1212_v31 }
 0xcb0   :  { %v934_v52 = vmul.f32 -1.442695, %v733_v48 }
 0xcb1   :  { %v736_v53 = vmul.f32 %v734_v50, %v1219_v36 }
 0xcb2   :  { %1024 = vpow2.f32 %v934_v52 }
 0xcb3   :  { %v935_v54 = vmul.f32 -1.442695, %v736_v53 }
 0xcb5   :  { %1026 = vpow2.f32 %v935_v54 }
 0xcbc   :  { %v1025_v55 = vpop.eup %1024 }
 0xcbd   :  { %v743_v56 = vadd.f32 1.0, %v1025_v55 }
 0xcbf   :  { %v1027_v57 = vpop.eup %1026  ;;  %1028 = vrcp.f32 %v743_v56 }
 0xcc0   :  { %v744_v58 = vadd.f32 1.0, %v1027_v57 }
 0xcc2   :  { %1030 = vrcp.f32 %v744_v58 }
 0xcc9   :  { %v1029_v60 = vpop.eup %1028 }
 0xcca   :  { %v756_v61 = vmul.f32 %v1029_v60, %v754_v59 }
 0xccc   :  { %v1031_v62 = vpop.eup %1030 }
 0xccd   :  { %v750_v63 = vmul.f32 %v1031_v62, %v1219_v36 }
 0xccf   :  { %v752_v0 = vsub.f32 %v750_v63, %v1225_v51 }
 0xcd1   :  { %v757_v5 = vmul.f32 %v1029_v60, %v752_v0 }
 0xcd3   :  { %759 = vrot.lane.b32.xlu0 %v757_v5, %s1098_s3 }
 0xd45   :  { %v760_v7 = vpop.permute.xlu0 %759 }
 0xd46   :  { %v762_v8 = vadd.f32 %v760_v7, %v756_v61 }
 0xd48   :  { %1032 = vtanh.f32 %v762_v8  ;;  %v841_v16 = vrot.slane %v762_v8, 6 }
 0xd52   :  { %v1033_v10 = vpop.eup %1032 }
 0xd53   :  { %v764_v11 = vmul.f32 %v1033_v10, %v752_v0 }
 0xd55   :  { %v765_v12 = vpack.c.bf16 %v764_v11, %v764_v11 }
 0xd57   :  { %v767_v13 = vrot.slane %v765_v12, 2 }
 0xd59   :  { %768 = vrot.lane.b32.xlu1 %v767_v13, %s1098_s3 }
 0xd5d   :  { %858 = vrot.lane.b32.xlu1 %v939_v18, %s1098_s3 }
 0xdcb   :  { %v769_v17 = vpop.permute.xlu1 %768 }
 0xdcc   :  { %936 = vmatmul.mubr.msk.bf16.vlgmr.msra.gmra.mrb[16].mxu0 %vm177_vm3, %v769_v17 }
 0xdcf   :  { %v859_v38 = vpop.permute.xlu1 %858 }
 0xe9f   :  { %v807_v19 = vpop.f32.mrb[16].mxu0 }
 0xea0   :  { %v816_v20 = vrot.slane %v807_v19, 2  ;;  %v809_v21 = vpop.f32.mrb[17].mxu0 }
 0xea1   :  { %v817_v22 = vrot.slane %v809_v21, 2  ;;  %v811_v23 = vpop.f32.mrb[18].mxu0 }
 0xea2   :  { %v820_v24 = vadd.f32 %v816_v20, %v1210_v29  ;;  %v812_v3 = vpop.f32.mrb[19].mxu0 }
 0xea3   :  { %v821_v1 = vadd.f32 %v817_v22, %v1212_v31 }
 0xea4   :  { %v937_v4 = vmul.f32 -1.442695, %v820_v24 }
 0xea5   :  { %v823_v25 = vmul.f32 %v821_v1, %v1219_v36 }
 0xea6   :  { %1034 = vpow2.f32 %v937_v4 }
 0xea7   :  { %v938_v6 = vmul.f32 -1.442695, %v823_v25 }
 0xea9   :  { %1036 = vpow2.f32 %v938_v6 }
 0xeb0   :  { %v1035_v9 = vpop.eup %1034 }
 0xeb1   :  { %v830_v14 = vadd.f32 1.0, %v1035_v9 }
 0xeb3   :  { %v1037_v15 = vpop.eup %1036  ;;  %1038 = vrcp.f32 %v830_v14 }
 0xeb4   :  { %v831_v26 = vadd.f32 1.0, %v1037_v15 }
 0xeb6   :  { %1040 = vrcp.f32 %v831_v26 }
 0xebd   :  { %v1039_v27 = vpop.eup %1038 }
 0xebe   :  { %v843_v28 = vmul.f32 %v1039_v27, %v841_v16 }
 0xec0   :  { %v1041_v30 = vpop.eup %1040 }
 0xec1   :  { %v837_v29 = vmul.f32 %v1041_v30, %v1219_v36 }
 0xec3   :  { %v839_v31 = vsub.f32 %v837_v29, %v1225_v51 }
 0xec5   :  { %v844_v34 = vmul.f32 %v1039_v27, %v839_v31 }
 0xec7   :  { %846 = vrot.lane.b32.xlu0 %v844_v34, %s1098_s3 }
 0xf39   :  { %v847_v2 = vpop.permute.xlu0 %846 }
 0xf3a   :  { %v849_v35 = vadd.f32 %v847_v2, %v843_v28 }
 0xf3c   :  { %1042 = vtanh.f32 %v849_v35 }
 0xf46   :  { %v1043_v37 = vpop.eup %1042 }
 0xf47   :  { %v851_v39 = vmul.f32 %v1043_v37, %v839_v31 }
 0xf49   :  { %v861_v32 = vmul.f32 %v859_v38, %v851_v39 }
 0xf4b   :  { %863 = vrot.lane.b32.xlu0 %v861_v32, %s1098_s3 }
 0xfbd   :  { %v864_v33 = vpop.permute.xlu0 %863 }
 0xfbe   :  { %v867_v40 = vsel %vm866_vm4, %v864_v33, 0.0 }
 0xfbf   :  { %868 = vadd.xlane.f32.xlu1 %v867_v40 }
0x104c   :  { %v869_v36 = vpop.xlane.xlu1 %868 }
0x104d   :  { %v877_v42 = vadd.f32 %v940_v41, %v869_v36 }
0x104f   :  { %880 = vperm.xlu0 %949, %v877_v42  }
0x1053   :  { %884 = vrot.lane.b32.xlu0 %v851_v39, %s1098_s3 }
0x10ce   :  { %v881_v51 = vpop.permute.xlu0 %880 }
0x10d2   :  { %v885_v43 = vpop.permute.xlu0 %884 }
0x10d3   :  { %v887_v44 = vsel %vm177_vm3, %v885_v43, %v881_v51 }
0x10d4   :  { %888 = vst [vmem:[#allocation6 - $0x6] sm:$0xc0] %v887_v44 }
0x10d5   :  { %1077 = shalt.err (!%p1074_p12)
}
0x10d6   :  { %s1078_s23 = scalar_lea.hbm %s1354_s6, 32 }
0x10d7   :  { %p1079_p13 = scmp.ne.s32.totalorder %s1354_s6, %s1078_s23  ;;  %p1082_p0 = scmp.lt.u32.totalorder %s1078_s23, %s1354_s6 }
0x10d9   :  { %p1084_p1 = pnand %p1082_p0, %p1079_p13 }
0x10db   :  { %1087 = shalt.err (!%p1084_p1)
}
0x10dc   :  { %898 = dma.vmem_to_hbm [thread:$0]  %s896_s19, 32, %s1354_s6, [#allocation5]  }
0x10dd   :  { %1090 = dma.done.wait [#allocation5], 32  }
0x10de   :  { %1091 = vsyncadd [#allocation5], 4294967264 }
0x10df   :  { %902 = vsyncpa [#allocation4], 1 }
0x10e0   :  { %903 = vsyncpa [#allocation5], 1 }

</bundles_post_ra>
